<compile_context>
chip_gen: v5e
topology: v5e:2x2
jax: 0.10.0
libtpu: 0.0.40
codegen_flags: <defaults>
</compile_context>

<pallas_src>
import functools

import jax
import jax.numpy as jnp
import numpy as np
from jax import lax
from jax.experimental import pallas as pl
from jax.experimental.pallas import tpu as pltpu


def rwa_net_kernel(x_ref, wx_ref, bx_ref, wh_ref, h0_ref, wout_ref, bout_ref,
                   y_ref, *, seq_len, batch, hidden):
    """x_ref:    (S*B, I)  time-major: row t*B + b is step t, batch b
       wx_ref:   (I, 3H)   [W_u | W_gx | W_ax]
       bx_ref:   (1, 3H)   [b_u | b_g  | 0   ]
       wh_ref:   (H, 2H)   [W_gh | W_ah]
       h0_ref:   (1, H)    tanh(s)
       wout_ref: (H, 1), bout_ref: (1, 1), y_ref: (B, 1)."""
    S, B, H = seq_len, batch, hidden

    # --- Hoisted input projection: one MXU matmul + one bias add for ALL steps. ---
    gates_x = (jnp.dot(x_ref[...], wx_ref[...],
                       preferred_element_type=jnp.float32)
               + bx_ref[...])                                   # (S*B, 3H)

    # --- Register-resident recurrent state; broadcasts hoisted out of the loop. ---
    h = jnp.broadcast_to(h0_ref[...], (B, H))
    n = jnp.zeros((B, H), jnp.float32)
    d = jnp.zeros((B, H), jnp.float32)
    a_max = jnp.full((B, H), -1e38, jnp.float32)
    w_h = wh_ref[...]                                           # load once

    # --- Fully unrolled recurrence (S small & static); equivalent to
    #     lax.fori_loop(..., unroll=True) but with static slices of gates_x. ---
    for t in range(S):
        gx = gates_x[t * B:(t + 1) * B, :]                      # (B, 3H)
        gh = jnp.dot(h, w_h, preferred_element_type=jnp.float32)  # (B, 2H)
        u = gx[:, 0 * H:1 * H]
        g = gx[:, 1 * H:2 * H] + gh[:, 0 * H:1 * H]
        a = gx[:, 2 * H:3 * H] + gh[:, 1 * H:2 * H]
        z = u * jnp.tanh(g)
        a_new = jnp.maximum(a_max, a)
        exp_diff = jnp.exp(a_max - a_new)
        exp_scaled = jnp.exp(a - a_new)
        n = n * exp_diff + z * exp_scaled
        d = d * exp_diff + exp_scaled
        h = jnp.tanh(n / d)
        a_max = a_new

    # --- Output head on the final hidden state only: sigmoid(Linear(h_S)). ---
    logits = (jnp.dot(h, wout_ref[...], preferred_element_type=jnp.float32)
              + bout_ref[...])                                  # (B, 1)
    y_ref[...] = jax.nn.sigmoid(logits)


def init_params(key, idim, hdim):
    """Deterministic RWA + output-layer parameters."""
    ks = jax.random.split(key, 10)

    def u(k, shape, fan_in):
        bound = 1.0 / np.sqrt(fan_in)
        return jax.random.uniform(k, shape, jnp.float32, -bound, bound)

    return {
        "w_u":   u(ks[0], (idim, hdim), idim),
        "b_u":   u(ks[1], (hdim,), idim),
        "w_gx":  u(ks[2], (idim, hdim), idim + hdim),
        "w_gh":  u(ks[3], (hdim, hdim), idim + hdim),
        "b_g":   u(ks[4], (hdim,), idim + hdim),
        "w_ax":  u(ks[5], (idim, hdim), idim + hdim),
        "w_ah":  u(ks[6], (hdim, hdim), idim + hdim),
        "s":     jax.random.normal(ks[7], (hdim,), jnp.float32),   # learned init state
        "w_out": u(ks[8], (1, hdim), hdim),                        # nn.Linear(odim,1).weight
        "b_out": u(ks[9], (1,), hdim),
    }


def rwa_net_forward(x, params):
    B, S, I = x.shape
    H = params["w_gh"].shape[0]

    # Parameter packing (plain JAX, outside the kernel).
    w_x = jnp.concatenate([params["w_u"], params["w_gx"], params["w_ax"]], axis=1)  # (I, 3H)
    b_x = jnp.concatenate([params["b_u"], params["b_g"],
                           jnp.zeros((H,), jnp.float32)]).reshape(1, 3 * H)          # (1, 3H)
    w_h = jnp.concatenate([params["w_gh"], params["w_ah"]], axis=1)                  # (H, 2H)
    h0 = jnp.tanh(params["s"]).reshape(1, H)
    w_out = params["w_out"].T                                                        # (H, 1)
    b_out = params["b_out"].reshape(1, 1)

    # Time-major flatten so each step's batch rows are contiguous in the kernel.
    x_tm = jnp.transpose(x, (1, 0, 2)).reshape(S * B, I)

    vmem = pl.BlockSpec(memory_space=pltpu.MemorySpace.VMEM)
    kernel = functools.partial(rwa_net_kernel, seq_len=S, batch=B, hidden=H)
    return pl.pallas_call(
        kernel,
        out_shape=jax.ShapeDtypeStruct((B, 1), jnp.float32),
        in_specs=[vmem] * 7,
        out_specs=vmem,
    )(x_tm, w_x, b_x, w_h, h0, w_out, b_out)


def rwa_net_reference(x, params):
    """Pure-JAX reference reproducing the RWANet forward pass."""
    B, S, I = x.shape
    H = params["w_gh"].shape[0]

    def step(carry, x_t):
        h, n, d, a_max = carry
        u = x_t @ params["w_u"] + params["b_u"]
        g = x_t @ params["w_gx"] + h @ params["w_gh"] + params["b_g"]
        a = x_t @ params["w_ax"] + h @ params["w_ah"]
        z = u * jnp.tanh(g)
        a_new = jnp.maximum(a_max, a)
        exp_diff = jnp.exp(a_max - a_new)
        exp_scaled = jnp.exp(a - a_new)
        n = n * exp_diff + z * exp_scaled
        d = d * exp_diff + exp_scaled
        h = jnp.tanh(n / d)
        return (h, n, d, a_new), None

    h0 = jnp.broadcast_to(jnp.tanh(params["s"]), (B, H))
    zeros = jnp.zeros((B, H), jnp.float32)
    a0 = jnp.full((B, H), -1e38, jnp.float32)
    (h_f, _, _, _), _ = lax.scan(step, (h0, zeros, zeros, a0),
                                 jnp.transpose(x, (1, 0, 2)))     # scan over time
    return jax.nn.sigmoid(h_f @ params["w_out"].T + params["b_out"])


if __name__ == "__main__":
    B, S, I, H = 2, 8, 16, 32   # batch, seq, idim, odim(hidden)

    key = jax.random.PRNGKey(0)
    kx, kp = jax.random.split(key)
    x = jax.random.normal(kx, (B, S, I), jnp.float32)
    params = init_params(kp, I, H)

    y = jax.block_until_ready(rwa_net_forward(x, params))
    y_ref = jax.block_until_ready(rwa_net_reference(x, params))

    np.testing.assert_allclose(np.asarray(y), np.asarray(y_ref), rtol=1e-5, atol=1e-5)
    assert y.shape == (B, 1)

    print("KERNEL_OK")
</pallas_src>

<mosaic_0001>
module attributes {stable_mosaic.version = 11 : i64} {
  func.func @rwa_net_kernel(%arg0: memref<16x16xf32, #tpu.memory_space<vmem>>, %arg1: memref<16x96xf32, #tpu.memory_space<vmem>>, %arg2: memref<1x96xf32, #tpu.memory_space<vmem>>, %arg3: memref<32x64xf32, #tpu.memory_space<vmem>>, %arg4: memref<1x32xf32, #tpu.memory_space<vmem>>, %arg5: memref<32x1xf32, #tpu.memory_space<vmem>>, %arg6: memref<1x1xf32, #tpu.memory_space<vmem>>, %arg7: memref<2x1xf32, #tpu.memory_space<vmem>>) attributes {dimension_semantics = [], scalar_prefetch = 0 : i64, scratch_operands = 0 : i64, tpu.core_type = #tpu.core_type<tc>} {
    %c0 = arith.constant 0 : index
    %c0_0 = arith.constant 0 : index
    %0 = vector.load %arg0[%c0, %c0_0] : memref<16x16xf32, #tpu.memory_space<vmem>>, vector<16x16xf32>
    %c0_1 = arith.constant 0 : index
    %c0_2 = arith.constant 0 : index
    %1 = vector.load %arg1[%c0_1, %c0_2] : memref<16x96xf32, #tpu.memory_space<vmem>>, vector<16x96xf32>
    %cst = arith.constant dense<0.000000e+00> : vector<16x96xf32>
    %2 = tpu.matmul %0, %1, %cst {dimension_numbers = #tpu.dot_dimension_numbers<[1], [0], [0], [1], [0, 0, 1, 1], [], []>} : vector<16x16xf32>, vector<16x96xf32>, vector<16x96xf32> -> vector<16x96xf32>
    %c0_3 = arith.constant 0 : index
    %c0_4 = arith.constant 0 : index
    %3 = vector.load %arg2[%c0_3, %c0_4] : memref<1x96xf32, #tpu.memory_space<vmem>>, vector<1x96xf32>
    %4 = vector.broadcast %3 : vector<1x96xf32> to vector<16x96xf32>
    %5 = arith.addf %2, %4 : vector<16x96xf32>
    %c0_5 = arith.constant 0 : index
    %c0_6 = arith.constant 0 : index
    %6 = vector.load %arg4[%c0_5, %c0_6] : memref<1x32xf32, #tpu.memory_space<vmem>>, vector<1x32xf32>
    %7 = vector.shape_cast %6 : vector<1x32xf32> to vector<1x32xf32>
    %8 = vector.broadcast %7 : vector<1x32xf32> to vector<2x32xf32>
    %cst_7 = arith.constant 0.000000e+00 : f32
    %9 = vector.broadcast %cst_7 : f32 to vector<2x32xf32>
    %cst_8 = arith.constant 0.000000e+00 : f32
    %10 = vector.broadcast %cst_8 : f32 to vector<2x32xf32>
    %cst_9 = arith.constant -9.99999968E+37 : f32
    %11 = vector.broadcast %cst_9 : f32 to vector<2x32xf32>
    %c0_10 = arith.constant 0 : index
    %c0_11 = arith.constant 0 : index
    %12 = vector.load %arg3[%c0_10, %c0_11] : memref<32x64xf32, #tpu.memory_space<vmem>>, vector<32x64xf32>
    %13 = vector.extract_strided_slice %5 {offsets = [0, 0], sizes = [2, 96], strides = [1, 1]} : vector<16x96xf32> to vector<2x96xf32>
    %cst_12 = arith.constant dense<0.000000e+00> : vector<2x64xf32>
    %14 = tpu.matmul %8, %12, %cst_12 {dimension_numbers = #tpu.dot_dimension_numbers<[1], [0], [0], [1], [0, 0, 1, 1], [], []>} : vector<2x32xf32>, vector<32x64xf32>, vector<2x64xf32> -> vector<2x64xf32>
    %15 = vector.extract_strided_slice %13 {offsets = [0, 0], sizes = [2, 32], strides = [1, 1]} : vector<2x96xf32> to vector<2x32xf32>
    %16 = vector.extract_strided_slice %13 {offsets = [0, 32], sizes = [2, 32], strides = [1, 1]} : vector<2x96xf32> to vector<2x32xf32>
    %17 = vector.extract_strided_slice %14 {offsets = [0, 0], sizes = [2, 32], strides = [1, 1]} : vector<2x64xf32> to vector<2x32xf32>
    %18 = arith.addf %16, %17 : vector<2x32xf32>
    %19 = vector.extract_strided_slice %13 {offsets = [0, 64], sizes = [2, 32], strides = [1, 1]} : vector<2x96xf32> to vector<2x32xf32>
    %20 = vector.extract_strided_slice %14 {offsets = [0, 32], sizes = [2, 32], strides = [1, 1]} : vector<2x64xf32> to vector<2x32xf32>
    %21 = arith.addf %19, %20 : vector<2x32xf32>
    %22 = math.tanh %18 : vector<2x32xf32>
    %23 = arith.mulf %15, %22 : vector<2x32xf32>
    %24 = arith.maximumf %11, %21 : vector<2x32xf32>
    %25 = arith.subf %11, %24 : vector<2x32xf32>
    %26 = math.exp %25 : vector<2x32xf32>
    %27 = arith.subf %21, %24 : vector<2x32xf32>
    %28 = math.exp %27 : vector<2x32xf32>
    %29 = arith.mulf %9, %26 : vector<2x32xf32>
    %30 = arith.mulf %23, %28 : vector<2x32xf32>
    %31 = arith.addf %29, %30 : vector<2x32xf32>
    %32 = arith.mulf %10, %26 : vector<2x32xf32>
    %33 = arith.addf %32, %28 : vector<2x32xf32>
    %34 = arith.divf %31, %33 : vector<2x32xf32>
    %35 = math.tanh %34 : vector<2x32xf32>
    %36 = vector.extract_strided_slice %5 {offsets = [2, 0], sizes = [2, 96], strides = [1, 1]} : vector<16x96xf32> to vector<2x96xf32>
    %cst_13 = arith.constant dense<0.000000e+00> : vector<2x64xf32>
    %37 = tpu.matmul %35, %12, %cst_13 {dimension_numbers = #tpu.dot_dimension_numbers<[1], [0], [0], [1], [0, 0, 1, 1], [], []>} : vector<2x32xf32>, vector<32x64xf32>, vector<2x64xf32> -> vector<2x64xf32>
    %38 = vector.extract_strided_slice %36 {offsets = [0, 0], sizes = [2, 32], strides = [1, 1]} : vector<2x96xf32> to vector<2x32xf32>
    %39 = vector.extract_strided_slice %36 {offsets = [0, 32], sizes = [2, 32], strides = [1, 1]} : vector<2x96xf32> to vector<2x32xf32>
    %40 = vector.extract_strided_slice %37 {offsets = [0, 0], sizes = [2, 32], strides = [1, 1]} : vector<2x64xf32> to vector<2x32xf32>
    %41 = arith.addf %39, %40 : vector<2x32xf32>
    %42 = vector.extract_strided_slice %36 {offsets = [0, 64], sizes = [2, 32], strides = [1, 1]} : vector<2x96xf32> to vector<2x32xf32>
    %43 = vector.extract_strided_slice %37 {offsets = [0, 32], sizes = [2, 32], strides = [1, 1]} : vector<2x64xf32> to vector<2x32xf32>
    %44 = arith.addf %42, %43 : vector<2x32xf32>
    %45 = math.tanh %41 : vector<2x32xf32>
    %46 = arith.mulf %38, %45 : vector<2x32xf32>
    %47 = arith.maximumf %24, %44 : vector<2x32xf32>
    %48 = arith.subf %24, %47 : vector<2x32xf32>
    %49 = math.exp %48 : vector<2x32xf32>
    %50 = arith.subf %44, %47 : vector<2x32xf32>
    %51 = math.exp %50 : vector<2x32xf32>
    %52 = arith.mulf %31, %49 : vector<2x32xf32>
    %53 = arith.mulf %46, %51 : vector<2x32xf32>
    %54 = arith.addf %52, %53 : vector<2x32xf32>
    %55 = arith.mulf %33, %49 : vector<2x32xf32>
    %56 = arith.addf %55, %51 : vector<2x32xf32>
    %57 = arith.divf %54, %56 : vector<2x32xf32>
    %58 = math.tanh %57 : vector<2x32xf32>
    %59 = vector.extract_strided_slice %5 {offsets = [4, 0], sizes = [2, 96], strides = [1, 1]} : vector<16x96xf32> to vector<2x96xf32>
    %cst_14 = arith.constant dense<0.000000e+00> : vector<2x64xf32>
    %60 = tpu.matmul %58, %12, %cst_14 {dimension_numbers = #tpu.dot_dimension_numbers<[1], [0], [0], [1], [0, 0, 1, 1], [], []>} : vector<2x32xf32>, vector<32x64xf32>, vector<2x64xf32> -> vector<2x64xf32>
    %61 = vector.extract_strided_slice %59 {offsets = [0, 0], sizes = [2, 32], strides = [1, 1]} : vector<2x96xf32> to vector<2x32xf32>
    %62 = vector.extract_strided_slice %59 {offsets = [0, 32], sizes = [2, 32], strides = [1, 1]} : vector<2x96xf32> to vector<2x32xf32>
    %63 = vector.extract_strided_slice %60 {offsets = [0, 0], sizes = [2, 32], strides = [1, 1]} : vector<2x64xf32> to vector<2x32xf32>
    %64 = arith.addf %62, %63 : vector<2x32xf32>
    %65 = vector.extract_strided_slice %59 {offsets = [0, 64], sizes = [2, 32], strides = [1, 1]} : vector<2x96xf32> to vector<2x32xf32>
    %66 = vector.extract_strided_slice %60 {offsets = [0, 32], sizes = [2, 32], strides = [1, 1]} : vector<2x64xf32> to vector<2x32xf32>
    %67 = arith.addf %65, %66 : vector<2x32xf32>
    %68 = math.tanh %64 : vector<2x32xf32>
    %69 = arith.mulf %61, %68 : vector<2x32xf32>
    %70 = arith.maximumf %47, %67 : vector<2x32xf32>
    %71 = arith.subf %47, %70 : vector<2x32xf32>
    %72 = math.exp %71 : vector<2x32xf32>
    %73 = arith.subf %67, %70 : vector<2x32xf32>
    %74 = math.exp %73 : vector<2x32xf32>
    %75 = arith.mulf %54, %72 : vector<2x32xf32>
    %76 = arith.mulf %69, %74 : vector<2x32xf32>
    %77 = arith.addf %75, %76 : vector<2x32xf32>
    %78 = arith.mulf %56, %72 : vector<2x32xf32>
    %79 = arith.addf %78, %74 : vector<2x32xf32>
    %80 = arith.divf %77, %79 : vector<2x32xf32>
    %81 = math.tanh %80 : vector<2x32xf32>
    %82 = vector.extract_strided_slice %5 {offsets = [6, 0], sizes = [2, 96], strides = [1, 1]} : vector<16x96xf32> to vector<2x96xf32>
    %cst_15 = arith.constant dense<0.000000e+00> : vector<2x64xf32>
    %83 = tpu.matmul %81, %12, %cst_15 {dimension_numbers = #tpu.dot_dimension_numbers<[1], [0], [0], [1], [0, 0, 1, 1], [], []>} : vector<2x32xf32>, vector<32x64xf32>, vector<2x64xf32> -> vector<2x64xf32>
    %84 = vector.extract_strided_slice %82 {offsets = [0, 0], sizes = [2, 32], strides = [1, 1]} : vector<2x96xf32> to vector<2x32xf32>
    %85 = vector.extract_strided_slice %82 {offsets = [0, 32], sizes = [2, 32], strides = [1, 1]} : vector<2x96xf32> to vector<2x32xf32>
    %86 = vector.extract_strided_slice %83 {offsets = [0, 0], sizes = [2, 32], strides = [1, 1]} : vector<2x64xf32> to vector<2x32xf32>
    %87 = arith.addf %85, %86 : vector<2x32xf32>
    %88 = vector.extract_strided_slice %82 {offsets = [0, 64], sizes = [2, 32], strides = [1, 1]} : vector<2x96xf32> to vector<2x32xf32>
    %89 = vector.extract_strided_slice %83 {offsets = [0, 32], sizes = [2, 32], strides = [1, 1]} : vector<2x64xf32> to vector<2x32xf32>
    %90 = arith.addf %88, %89 : vector<2x32xf32>
    %91 = math.tanh %87 : vector<2x32xf32>
    %92 = arith.mulf %84, %91 : vector<2x32xf32>
    %93 = arith.maximumf %70, %90 : vector<2x32xf32>
    %94 = arith.subf %70, %93 : vector<2x32xf32>
    %95 = math.exp %94 : vector<2x32xf32>
    %96 = arith.subf %90, %93 : vector<2x32xf32>
    %97 = math.exp %96 : vector<2x32xf32>
    %98 = arith.mulf %77, %95 : vector<2x32xf32>
    %99 = arith.mulf %92, %97 : vector<2x32xf32>
    %100 = arith.addf %98, %99 : vector<2x32xf32>
    %101 = arith.mulf %79, %95 : vector<2x32xf32>
    %102 = arith.addf %101, %97 : vector<2x32xf32>
    %103 = arith.divf %100, %102 : vector<2x32xf32>
    %104 = math.tanh %103 : vector<2x32xf32>
    %105 = vector.extract_strided_slice %5 {offsets = [8, 0], sizes = [2, 96], strides = [1, 1]} : vector<16x96xf32> to vector<2x96xf32>
    %cst_16 = arith.constant dense<0.000000e+00> : vector<2x64xf32>
    %106 = tpu.matmul %104, %12, %cst_16 {dimension_numbers = #tpu.dot_dimension_numbers<[1], [0], [0], [1], [0, 0, 1, 1], [], []>} : vector<2x32xf32>, vector<32x64xf32>, vector<2x64xf32> -> vector<2x64xf32>
    %107 = vector.extract_strided_slice %105 {offsets = [0, 0], sizes = [2, 32], strides = [1, 1]} : vector<2x96xf32> to vector<2x32xf32>
    %108 = vector.extract_strided_slice %105 {offsets = [0, 32], sizes = [2, 32], strides = [1, 1]} : vector<2x96xf32> to vector<2x32xf32>
    %109 = vector.extract_strided_slice %106 {offsets = [0, 0], sizes = [2, 32], strides = [1, 1]} : vector<2x64xf32> to vector<2x32xf32>
    %110 = arith.addf %108, %109 : vector<2x32xf32>
    %111 = vector.extract_strided_slice %105 {offsets = [0, 64], sizes = [2, 32], strides = [1, 1]} : vector<2x96xf32> to vector<2x32xf32>
    %112 = vector.extract_strided_slice %106 {offsets = [0, 32], sizes = [2, 32], strides = [1, 1]} : vector<2x64xf32> to vector<2x32xf32>
    %113 = arith.addf %111, %112 : vector<2x32xf32>
    %114 = math.tanh %110 : vector<2x32xf32>
    %115 = arith.mulf %107, %114 : vector<2x32xf32>
    %116 = arith.maximumf %93, %113 : vector<2x32xf32>
    %117 = arith.subf %93, %116 : vector<2x32xf32>
    %118 = math.exp %117 : vector<2x32xf32>
    %119 = arith.subf %113, %116 : vector<2x32xf32>
    %120 = math.exp %119 : vector<2x32xf32>
    %121 = arith.mulf %100, %118 : vector<2x32xf32>
    %122 = arith.mulf %115, %120 : vector<2x32xf32>
    %123 = arith.addf %121, %122 : vector<2x32xf32>
    %124 = arith.mulf %102, %118 : vector<2x32xf32>
    %125 = arith.addf %124, %120 : vector<2x32xf32>
    %126 = arith.divf %123, %125 : vector<2x32xf32>
    %127 = math.tanh %126 : vector<2x32xf32>
    %128 = vector.extract_strided_slice %5 {offsets = [10, 0], sizes = [2, 96], strides = [1, 1]} : vector<16x96xf32> to vector<2x96xf32>
    %cst_17 = arith.constant dense<0.000000e+00> : vector<2x64xf32>
    %129 = tpu.matmul %127, %12, %cst_17 {dimension_numbers = #tpu.dot_dimension_numbers<[1], [0], [0], [1], [0, 0, 1, 1], [], []>} : vector<2x32xf32>, vector<32x64xf32>, vector<2x64xf32> -> vector<2x64xf32>
    %130 = vector.extract_strided_slice %128 {offsets = [0, 0], sizes = [2, 32], strides = [1, 1]} : vector<2x96xf32> to vector<2x32xf32>
    %131 = vector.extract_strided_slice %128 {offsets = [0, 32], sizes = [2, 32], strides = [1, 1]} : vector<2x96xf32> to vector<2x32xf32>
    %132 = vector.extract_strided_slice %129 {offsets = [0, 0], sizes = [2, 32], strides = [1, 1]} : vector<2x64xf32> to vector<2x32xf32>
    %133 = arith.addf %131, %132 : vector<2x32xf32>
    %134 = vector.extract_strided_slice %128 {offsets = [0, 64], sizes = [2, 32], strides = [1, 1]} : vector<2x96xf32> to vector<2x32xf32>
    %135 = vector.extract_strided_slice %129 {offsets = [0, 32], sizes = [2, 32], strides = [1, 1]} : vector<2x64xf32> to vector<2x32xf32>
    %136 = arith.addf %134, %135 : vector<2x32xf32>
    %137 = math.tanh %133 : vector<2x32xf32>
    %138 = arith.mulf %130, %137 : vector<2x32xf32>
    %139 = arith.maximumf %116, %136 : vector<2x32xf32>
    %140 = arith.subf %116, %139 : vector<2x32xf32>
    %141 = math.exp %140 : vector<2x32xf32>
    %142 = arith.subf %136, %139 : vector<2x32xf32>
    %143 = math.exp %142 : vector<2x32xf32>
    %144 = arith.mulf %123, %141 : vector<2x32xf32>
    %145 = arith.mulf %138, %143 : vector<2x32xf32>
    %146 = arith.addf %144, %145 : vector<2x32xf32>
    %147 = arith.mulf %125, %141 : vector<2x32xf32>
    %148 = arith.addf %147, %143 : vector<2x32xf32>
    %149 = arith.divf %146, %148 : vector<2x32xf32>
    %150 = math.tanh %149 : vector<2x32xf32>
    %151 = vector.extract_strided_slice %5 {offsets = [12, 0], sizes = [2, 96], strides = [1, 1]} : vector<16x96xf32> to vector<2x96xf32>
    %cst_18 = arith.constant dense<0.000000e+00> : vector<2x64xf32>
    %152 = tpu.matmul %150, %12, %cst_18 {dimension_numbers = #tpu.dot_dimension_numbers<[1], [0], [0], [1], [0, 0, 1, 1], [], []>} : vector<2x32xf32>, vector<32x64xf32>, vector<2x64xf32> -> vector<2x64xf32>
    %153 = vector.extract_strided_slice %151 {offsets = [0, 0], sizes = [2, 32], strides = [1, 1]} : vector<2x96xf32> to vector<2x32xf32>
    %154 = vector.extract_strided_slice %151 {offsets = [0, 32], sizes = [2, 32], strides = [1, 1]} : vector<2x96xf32> to vector<2x32xf32>
    %155 = vector.extract_strided_slice %152 {offsets = [0, 0], sizes = [2, 32], strides = [1, 1]} : vector<2x64xf32> to vector<2x32xf32>
    %156 = arith.addf %154, %155 : vector<2x32xf32>
    %157 = vector.extract_strided_slice %151 {offsets = [0, 64], sizes = [2, 32], strides = [1, 1]} : vector<2x96xf32> to vector<2x32xf32>
    %158 = vector.extract_strided_slice %152 {offsets = [0, 32], sizes = [2, 32], strides = [1, 1]} : vector<2x64xf32> to vector<2x32xf32>
    %159 = arith.addf %157, %158 : vector<2x32xf32>
    %160 = math.tanh %156 : vector<2x32xf32>
    %161 = arith.mulf %153, %160 : vector<2x32xf32>
    %162 = arith.maximumf %139, %159 : vector<2x32xf32>
    %163 = arith.subf %139, %162 : vector<2x32xf32>
    %164 = math.exp %163 : vector<2x32xf32>
    %165 = arith.subf %159, %162 : vector<2x32xf32>
    %166 = math.exp %165 : vector<2x32xf32>
    %167 = arith.mulf %146, %164 : vector<2x32xf32>
    %168 = arith.mulf %161, %166 : vector<2x32xf32>
    %169 = arith.addf %167, %168 : vector<2x32xf32>
    %170 = arith.mulf %148, %164 : vector<2x32xf32>
    %171 = arith.addf %170, %166 : vector<2x32xf32>
    %172 = arith.divf %169, %171 : vector<2x32xf32>
    %173 = math.tanh %172 : vector<2x32xf32>
    %174 = vector.extract_strided_slice %5 {offsets = [14, 0], sizes = [2, 96], strides = [1, 1]} : vector<16x96xf32> to vector<2x96xf32>
    %cst_19 = arith.constant dense<0.000000e+00> : vector<2x64xf32>
    %175 = tpu.matmul %173, %12, %cst_19 {dimension_numbers = #tpu.dot_dimension_numbers<[1], [0], [0], [1], [0, 0, 1, 1], [], []>} : vector<2x32xf32>, vector<32x64xf32>, vector<2x64xf32> -> vector<2x64xf32>
    %176 = vector.extract_strided_slice %174 {offsets = [0, 0], sizes = [2, 32], strides = [1, 1]} : vector<2x96xf32> to vector<2x32xf32>
    %177 = vector.extract_strided_slice %174 {offsets = [0, 32], sizes = [2, 32], strides = [1, 1]} : vector<2x96xf32> to vector<2x32xf32>
    %178 = vector.extract_strided_slice %175 {offsets = [0, 0], sizes = [2, 32], strides = [1, 1]} : vector<2x64xf32> to vector<2x32xf32>
    %179 = arith.addf %177, %178 : vector<2x32xf32>
    %180 = vector.extract_strided_slice %174 {offsets = [0, 64], sizes = [2, 32], strides = [1, 1]} : vector<2x96xf32> to vector<2x32xf32>
    %181 = vector.extract_strided_slice %175 {offsets = [0, 32], sizes = [2, 32], strides = [1, 1]} : vector<2x64xf32> to vector<2x32xf32>
    %182 = arith.addf %180, %181 : vector<2x32xf32>
    %183 = math.tanh %179 : vector<2x32xf32>
    %184 = arith.mulf %176, %183 : vector<2x32xf32>
    %185 = arith.maximumf %162, %182 : vector<2x32xf32>
    %186 = arith.subf %162, %185 : vector<2x32xf32>
    %187 = math.exp %186 : vector<2x32xf32>
    %188 = arith.subf %182, %185 : vector<2x32xf32>
    %189 = math.exp %188 : vector<2x32xf32>
    %190 = arith.mulf %169, %187 : vector<2x32xf32>
    %191 = arith.mulf %184, %189 : vector<2x32xf32>
    %192 = arith.addf %190, %191 : vector<2x32xf32>
    %193 = arith.mulf %171, %187 : vector<2x32xf32>
    %194 = arith.addf %193, %189 : vector<2x32xf32>
    %195 = arith.divf %192, %194 : vector<2x32xf32>
    %196 = math.tanh %195 : vector<2x32xf32>
    %c0_20 = arith.constant 0 : index
    %c0_21 = arith.constant 0 : index
    %197 = vector.load %arg5[%c0_20, %c0_21] : memref<32x1xf32, #tpu.memory_space<vmem>>, vector<32x1xf32>
    %cst_22 = arith.constant dense<0.000000e+00> : vector<2x1xf32>
    %198 = tpu.matmul %196, %197, %cst_22 {dimension_numbers = #tpu.dot_dimension_numbers<[1], [0], [0], [1], [0, 0, 1, 1], [], []>} : vector<2x32xf32>, vector<32x1xf32>, vector<2x1xf32> -> vector<2x1xf32>
    %c0_23 = arith.constant 0 : index
    %c0_24 = arith.constant 0 : index
    %199 = vector.load %arg6[%c0_23, %c0_24] : memref<1x1xf32, #tpu.memory_space<vmem>>, vector<1x1xf32>
    %200 = vector.broadcast %199 : vector<1x1xf32> to vector<2x1xf32>
    %201 = arith.addf %198, %200 : vector<2x1xf32>
    %202 = arith.negf %201 : vector<2x1xf32>
    %203 = math.exp %202 : vector<2x1xf32>
    %cst_25 = arith.constant 1.000000e+00 : f32
    %204 = vector.broadcast %cst_25 : f32 to vector<2x1xf32>
    %205 = arith.addf %204, %203 : vector<2x1xf32>
    %206 = arith.divf %204, %205 : vector<2x1xf32>
    %c0_26 = arith.constant 0 : index
    %c0_27 = arith.constant 0 : index
    %207 = vector.load %arg7[%c0_26, %c0_27] : memref<2x1xf32, #tpu.memory_space<vmem>>, vector<2x1xf32>
    tpu.vector_store %arg7[%c0_26, %c0_27], %206 {strides = array<i32>} : memref<2x1xf32, #tpu.memory_space<vmem>>, vector<2x1xf32>,
    return
  }
}

</mosaic_0001>

<bundles_post_ra>
// kernel: tpu_custom_call.1
= control target key start
LH: loop header
LB: loop body
LE: loop exit
PB: predicated region body
PF: predicated region fallthrough
CT: control target
= control target key end

     0   :  { %s1156_s0 = inlined_call_operand.hbm [shape: f32[16,16], index: 0, kind: input, shape index: {}]   ;;  %s1157_s1 = inlined_call_operand.hbm [shape: f32[16,96], index: 1, kind: input, shape index: {}]   ;;  %s1158_s2 = inlined_call_operand.vmem [shape: f32[1,96], index: 2, kind: input, shape index: {}]   ;;  %s1159_s3 = inlined_call_operand.vmem [shape: f32[32,64], index: 3, kind: input, shape index: {}]   ;;  %s1160_s4 = inlined_call_operand.vmem [shape: f32[1,32], index: 4, kind: input, shape index: {}]   ;;  %s1161_s5 = inlined_call_operand.vmem [shape: f32[32,1], index: 5, kind: input, shape index: {}]   ;;  %s1162_s6 = inlined_call_operand.<no memory space> [shape: f32[1,1], index: 6, kind: input, shape index: {}]   ;;  %s1163_s7 = inlined_call_operand.vmem [shape: f32[2,1], index: 7, kind: output, shape index: {}]  }
   0x1   :  { %v12_v0 = vstv %s1162_s6 }
   0x2   :  { %13 = vst [vmem:[#allocation2] sm:$0x1] %v12_v0 }
   0x3   :  { %14 = vsyncpa [#allocation4], 0  ;;  %s20_s28 = sshll.u32 %s1156_s0, 4  ;;  %s21_s28 = int_to_ptr.hbm [resolvable:$true] %s20_s28 }
   0x4   :  { %15 = vsyncpa [#allocation6], 0  ;;  %s956_s29 = smov [#allocation3]   ;;  %s33_s10 = sshll.u32 %s1157_s1, 4  ;;  %s34_s10 = int_to_ptr.hbm [resolvable:$true] %s33_s10 }
   0x5   :  { %s22_s30 = sshll.u32 %s956_s29, 4  ;;  %s957_s11 = smov 128   ;;  %s23_s30 = int_to_ptr.vmem [resolvable:$true] %s22_s30 }
   0x6   :  { %s958_s12 = smov 8   ;;  %s959_s6 = smov [#allocation5]  }
   0x7   :  { %28 = dma.hbm_to_vmem [thread:$0]  %s21_s28, 256, %s23_s30, [#allocation4], %s957_s11, %s957_s11, %s958_s12  }
   0x8   :  { %s35_s13 = sshll.u32 %s959_s6, 4  ;;  %s36_s13 = int_to_ptr.vmem [resolvable:$true] %s35_s13 }
   0x9   :  { %41 = dma.hbm_to_vmem [thread:$0]  %s34_s10, 256, %s36_s13, [#allocation6], %s957_s11, %s957_s11, %s958_s12  }
   0xa   :  { %952 = dma.done.wait [#allocation4], 256  }
   0xb   :  { %953 = vsyncadd [#allocation4], 4294967040 }
   0xc   :  { %954 = dma.done.wait [#allocation6], 256  }
   0xd   :  { %955 = vsyncadd [#allocation6], 4294967040  ;;  %v104_v1 = vld [vmem:[%s1159_s3 + $0x18] sm:$0xff]  ;;  %v103_v2 = vld [vmem:[%s1159_s3 + $0x10] sm:$0xff]  ;;  %vm68_vm0 = vcmask 130048   ;;  %vm105_vm1 = vcmask 261120  }
   0xe   :  { %120 = vmatpush.msra.mxu1 %v104_v1  ;;  %191 = vmatpush.msra.mxu2 %v104_v1  ;;  %v102_v3 = vld [vmem:[%s1159_s3 + $0x8] sm:$0xff]  ;;  %v63_v4 = vld [vmem:[#allocation5 + $0x8] sm:$0xff]  ;;  %v62_v5 = vld [vmem:[#allocation5] sm:$0xff]  ;;  %s961_s23 = smov 96  }
   0xf   :  { %273 = vmatpush.msra.mxu3 %v104_v1  ;;  %89 = vmatpush.msra.mxu0 %v63_v4  ;;  %v60_v6 = vld [vmem:[#allocation3] sm:$0xff]  ;;  %v817_v8 = vld [vmem:[%s1160_s4] ss:$0 sm:$0xff] }
  0x10   :  { %121 = vmatpush.msra.mxu1 %v103_v2  ;;  %v101_v7 = vld [vmem:[%s1159_s3] sm:$0xff]  ;;  %192 = vmatpush.msra.mxu2 %v103_v2  ;;  %s960_s3 = smov 32  }
  0x11   :  { %274 = vmatpush.msra.mxu3 %v103_v2  ;;  %90 = vmatpush.msra.mxu0 %v62_v5  ;;  %v1033_v10 = vld [vmem:[%s1158_s2] ss:$0 sm:$0xff]  ;;  %s962_s2 = smov 64  }
  0x12   :  { %122 = vmatpush.msra.mxu1 %v102_v3  ;;  %798 = vmatmul.msk.f32.vlgmr.msra.gmra.mxu0 %vm68_vm0, %v60_v6 }
  0x13   :  { %193 = vmatpush.msra.mxu2 %v102_v3  ;;  %275 = vmatpush.msra.mxu3 %v102_v3 }
  0x14   :  { %123 = vmatpush.msra.mxu1 %v101_v7  ;;  %591 = vmatpush.msrb.mxu0 %v104_v1 }
  0x15   :  { %800 = vmatmul.msk.f32.vlgmr.msra.gmra.mxu1 %vm105_vm1, %v817_v8  ;;  %194 = vmatpush.msra.mxu2 %v101_v7 }
  0x16   :  { %276 = vmatpush.msra.mxu3 %v101_v7  ;;  %355 = vmatpush.msrb.mxu1 %v104_v1 }
  0x17   :  { %437 = vmatpush.msrb.mxu2 %v104_v1  ;;  %592 = vmatpush.msrb.mxu0 %v103_v2 }
  0x18   :  { %509 = vmatpush.msrb.mxu3 %v104_v1  ;;  %356 = vmatpush.msrb.mxu1 %v103_v2 }
  0x19   :  { %438 = vmatpush.msrb.mxu2 %v103_v2  ;;  %593 = vmatpush.msrb.mxu0 %v102_v3 }
  0x1a   :  { %510 = vmatpush.msrb.mxu3 %v103_v2  ;;  %357 = vmatpush.msrb.mxu1 %v102_v3 }
  0x1b   :  { %439 = vmatpush.msrb.mxu2 %v102_v3  ;;  %594 = vmatpush.msrb.mxu0 %v101_v7 }
  0x1c   :  { %511 = vmatpush.msrb.mxu3 %v102_v3  ;;  %358 = vmatpush.msrb.mxu1 %v101_v7 }
  0x1d   :  { %440 = vmatpush.msrb.mxu2 %v101_v7 }
  0x1e   :  { %512 = vmatpush.msrb.mxu3 %v101_v7  ;;  %673 = vmatpush.msra.mxu1 %v104_v1 }
  0x20   :  { %674 = vmatpush.msra.mxu1 %v103_v2 }
  0x22   :  { %675 = vmatpush.msra.mxu1 %v102_v3 }
  0x24   :  { %676 = vmatpush.msra.mxu1 %v101_v7 }
  0x8f   :  { %v92_v11 = vpop.f32.mrf.mxu0 }
  0x90   :  { %v1036_v12 = vadd.f32 %v1033_v10, %v92_v11 }
  0x92   :  { %v125_v9 = vpop.f32.mrf.mxu1 }
  0x93   :  { %129 = vrot.lane.b32.xlu0 %v125_v9, %s960_s3 }
 0x105   :  { %v130_v13 = vpop.permute.xlu0 %129 }
 0x106   :  { %v132_v14 = vadd.f32 %v130_v13, %v1036_v12 }
 0x108   :  { %820 = vtanh.f32 %v132_v14  ;;  %v1039_v15 = vmax.f32 %v132_v14, -1e+38 }
 0x10a   :  { %v143_v16 = vsub.f32 %v132_v14, %v1039_v15  ;;  %v140_v24 = vsub.f32 -1e+38, %v1039_v15 }
 0x10c   :  { %v144_v17 = vmul.f32 1.442695, %v143_v16  ;;  %v141_v25 = vmul.f32 1.442695, %v140_v24 }
 0x10e   :  { %v821_v18 = vpop.eup %820  ;;  %822 = vpow2.f32 %v144_v17 }
 0x10f   :  { %135 = vrot.lane.b32.xlu0 %v821_v18, %s961_s23  ;;  %824 = vpow2.f32 %v141_v25 }
 0x114   :  { %v823_v19 = vpop.eup %822 }
 0x115   :  { %148 = vrot.lane.b32.xlu1 %v823_v19, %s962_s2  ;;  %v825_v26 = vpop.eup %824 }
 0x116   :  { %v146_v27 = vmul.f32 0.0, %v825_v26 }
 0x118   :  { %v157_v28 = vadd.f32 %v823_v19, %v146_v27 }
 0x11a   :  { %826 = vrcp.f32 %v157_v28  ;;  %v169_v34 = vand.u32 2147483648, %v157_v28  ;;  %vm163_vm3 = vweird.f32 %v157_v28  ;;  %v167_v35 = vand.u32 2147483647, %v157_v28 }
 0x11c   :  { %v170_v37 = vor.u32 1.1754944e-38, %v169_v34  ;;  %vm168_vm5 = vcmp.eq.f32.partialorder %v167_v35, 8.507059e+37 }
 0x120   :  { %v827_v29 = vpop.eup %826 }
 0x121   :  { %v159_v30 = vmul.f32 %v827_v29, %v157_v28  ;;  %vm164_vm2 = vweird.f32 %v827_v29 }
 0x122   :  { %vm165_vm4 = vmor %vm163_vm3, %vm164_vm2 }
 0x123   :  { %v160_v31 = vsub.f32 1.0, %v159_v30 }
 0x125   :  { %v161_v32 = vmul.f32 %v827_v29, %v160_v31 }
 0x127   :  { %v162_v33 = vadd.f32 %v827_v29, %v161_v32 }
 0x129   :  { %v166_v36 = vsel %vm165_vm4, %v827_v29, %v162_v33 }
 0x12a   :  { %v171_v40 = vsel %vm168_vm5, %v170_v37, %v166_v36 }
 0x181   :  { %v136_v20 = vpop.permute.xlu0 %135 }
 0x182   :  { %v138_v21 = vmul.f32 %v136_v20, %v1036_v12 }
 0x187   :  { %v149_v22 = vpop.permute.xlu1 %148 }
 0x188   :  { %v151_v23 = vmul.f32 %v149_v22, %v138_v21 }
 0x18a   :  { %153 = vrot.lane.b32.xlu1 %v151_v23, %s962_s2 }
 0x1fc   :  { %v154_v38 = vpop.permute.xlu1 %153 }
 0x1fd   :  { %v156_v39 = vadd.f32 %v154_v38, %v146_v27 }
 0x1ff   :  { %v172_v41 = vmul.f32 %v171_v40, %v156_v39 }
 0x201   :  { %828 = vtanh.f32 %v172_v41 }
 0x207   :  { %v829_v42 = vpop.eup %828 }
 0x208   :  { %175 = vrot.lane.b32.xlu2 %v829_v42, %s962_s2 }
 0x262   :  { %v176_v43 = vpop.permute.xlu2 %175 }
 0x263   :  { %801 = vmatmul.msk.f32.vlgmr.msra.gmra.mxu2 %vm105_vm1, %v176_v43 }
 0x2e6   :  { %v196_v44 = vpop.f32.mrf.mxu2 }
 0x2e7   :  { %v200_v45 = vrot.slane %v196_v44, 6 }
 0x2e9   :  { %201 = vrot.lane.b32.xlu2 %v200_v45, %s960_s3 }
 0x343   :  { %v202_v46 = vpop.permute.xlu2 %201 }
 0x344   :  { %v204_v47 = vadd.f32 %v202_v46, %v1036_v12 }
 0x346   :  { %830 = vtanh.f32 %v204_v47  ;;  %v212_v48 = vrot.slane %v204_v47, 2 }
 0x348   :  { %v1052_v49 = vmax.f32 %v1039_v15, %v212_v48 }
 0x34a   :  { %v219_v50 = vrot.slane %v1052_v49, 6  ;;  %v215_v60 = vsub.f32 %v1039_v15, %v1052_v49 }
 0x34c   :  { %v831_v51 = vpop.eup %830  ;;  %v221_v52 = vsub.f32 %v204_v47, %v219_v50  ;;  %v216_v61 = vmul.f32 1.442695, %v215_v60 }
 0x34d   :  { %207 = vrot.lane.b32.xlu0 %v831_v51, %s961_s23 }
 0x34e   :  { %v222_v53 = vmul.f32 1.442695, %v221_v52 }
 0x350   :  { %832 = vpow2.f32 %v222_v53 }
 0x351   :  { %834 = vpow2.f32 %v216_v61 }
 0x356   :  { %v833_v54 = vpop.eup %832 }
 0x357   :  { %226 = vrot.lane.b32.xlu1 %v833_v54, %s962_s2  ;;  %v835_v62 = vpop.eup %834  ;;  %v237_v63 = vrot.slane %v833_v54, 2 }
 0x358   :  { %v236_v0 = vmul.f32 %v835_v62, %v157_v28  ;;  %v224_v9 = vmul.f32 %v835_v62, %v156_v39 }
 0x35a   :  { %v239_v1 = vadd.f32 %v237_v63, %v236_v0 }
 0x35c   :  { %836 = vrcp.f32 %v239_v1  ;;  %v251_v7 = vand.u32 2147483648, %v239_v1  ;;  %vm245_vm7 = vweird.f32 %v239_v1  ;;  %v249_v8 = vand.u32 2147483647, %v239_v1 }
 0x35e   :  { %v252_v13 = vor.u32 1.1754944e-38, %v251_v7  ;;  %vm250_vm9 = vcmp.eq.f32.partialorder %v249_v8, 8.507059e+37 }
 0x362   :  { %v837_v2 = vpop.eup %836 }
 0x363   :  { %v241_v3 = vmul.f32 %v837_v2, %v239_v1  ;;  %vm246_vm6 = vweird.f32 %v837_v2 }
 0x364   :  { %vm247_vm8 = vmor %vm245_vm7, %vm246_vm6 }
 0x365   :  { %v242_v4 = vsub.f32 1.0, %v241_v3 }
 0x367   :  { %v243_v5 = vmul.f32 %v837_v2, %v242_v4 }
 0x369   :  { %v244_v6 = vadd.f32 %v837_v2, %v243_v5 }
 0x36b   :  { %v248_v11 = vsel %vm247_vm8, %v837_v2, %v244_v6 }
 0x36c   :  { %v253_v16 = vsel %vm250_vm9, %v252_v13, %v248_v11 }
 0x3bf   :  { %v208_v55 = vpop.permute.xlu0 %207 }
 0x3c0   :  { %v210_v56 = vmul.f32 %v208_v55, %v1036_v12 }
 0x3c9   :  { %v227_v57 = vpop.permute.xlu1 %226 }
 0x3ca   :  { %v229_v58 = vmul.f32 %v227_v57, %v210_v56 }
 0x3cc   :  { %v231_v59 = vrot.slane %v229_v58, 2 }
 0x3ce   :  { %232 = vrot.lane.b32.xlu2 %v231_v59, %s962_s2 }
 0x428   :  { %v233_v14 = vpop.permute.xlu2 %232 }
 0x429   :  { %v235_v15 = vadd.f32 %v233_v14, %v224_v9 }
 0x42b   :  { %v254_v17 = vmul.f32 %v253_v16, %v235_v15 }
 0x42d   :  { %838 = vtanh.f32 %v254_v17 }
 0x433   :  { %v839_v18 = vpop.eup %838 }
 0x434   :  { %257 = vrot.lane.b32.xlu0 %v839_v18, %s962_s2 }
 0x4a6   :  { %v258_v19 = vpop.permute.xlu0 %257 }
 0x4a7   :  { %802 = vmatmul.msk.f32.vlgmr.msra.gmra.mxu3 %vm105_vm1, %v258_v19 }
 0x52a   :  { %v278_v20 = vpop.f32.mrf.mxu3 }
 0x52b   :  { %v282_v21 = vrot.slane %v278_v20, 4 }
 0x52d   :  { %283 = vrot.lane.b32.xlu1 %v282_v21, %s960_s3 }
 0x59f   :  { %v284_v22 = vpop.permute.xlu1 %283 }
 0x5a0   :  { %v286_v23 = vadd.f32 %v284_v22, %v1036_v12 }
 0x5a2   :  { %840 = vtanh.f32 %v286_v23  ;;  %v294_v24 = vrot.slane %v286_v23, 4 }
 0x5a4   :  { %v1066_v25 = vmax.f32 %v1052_v49, %v294_v24 }
 0x5a6   :  { %v301_v26 = vrot.slane %v1066_v25, 4  ;;  %v297_v36 = vsub.f32 %v1052_v49, %v1066_v25 }
 0x5a8   :  { %v841_v27 = vpop.eup %840  ;;  %v303_v28 = vsub.f32 %v286_v23, %v301_v26  ;;  %v298_v37 = vmul.f32 1.442695, %v297_v36 }
 0x5a9   :  { %289 = vrot.lane.b32.xlu2 %v841_v27, %s961_s23 }
 0x5aa   :  { %v304_v29 = vmul.f32 1.442695, %v303_v28 }
 0x5ac   :  { %842 = vpow2.f32 %v304_v29 }
 0x5ad   :  { %844 = vpow2.f32 %v298_v37 }
 0x5b2   :  { %v843_v30 = vpop.eup %842 }
 0x5b3   :  { %308 = vrot.lane.b32.xlu0 %v843_v30, %s962_s2  ;;  %v845_v38 = vpop.eup %844  ;;  %v319_v39 = vrot.slane %v843_v30, 4 }
 0x5b4   :  { %v318_v40 = vmul.f32 %v845_v38, %v239_v1  ;;  %v306_v50 = vmul.f32 %v845_v38, %v235_v15 }
 0x5b6   :  { %v321_v41 = vadd.f32 %v319_v39, %v318_v40 }
 0x5b8   :  { %846 = vrcp.f32 %v321_v41  ;;  %v333_v47 = vand.u32 2147483648, %v321_v41  ;;  %vm327_vm11 = vweird.f32 %v321_v41  ;;  %v331_v48 = vand.u32 2147483647, %v321_v41 }
 0x5ba   :  { %v334_v49 = vor.u32 1.1754944e-38, %v333_v47  ;;  %vm332_vm13 = vcmp.eq.f32.partialorder %v331_v48, 8.507059e+37 }
 0x5be   :  { %v847_v42 = vpop.eup %846 }
 0x5bf   :  { %v323_v43 = vmul.f32 %v847_v42, %v321_v41  ;;  %vm328_vm10 = vweird.f32 %v847_v42 }
 0x5c0   :  { %vm329_vm12 = vmor %vm327_vm11, %vm328_vm10 }
 0x5c1   :  { %v324_v44 = vsub.f32 1.0, %v323_v43 }
 0x5c3   :  { %v325_v45 = vmul.f32 %v847_v42, %v324_v44 }
 0x5c5   :  { %v326_v46 = vadd.f32 %v847_v42, %v325_v45 }
 0x5c7   :  { %v330_v51 = vsel %vm329_vm12, %v847_v42, %v326_v46 }
 0x5c8   :  { %v335_v54 = vsel %vm332_vm13, %v334_v49, %v330_v51 }
 0x603   :  { %v290_v31 = vpop.permute.xlu2 %289 }
 0x604   :  { %v292_v32 = vmul.f32 %v290_v31, %v1036_v12 }
 0x625   :  { %v309_v33 = vpop.permute.xlu0 %308 }
 0x626   :  { %v311_v34 = vmul.f32 %v309_v33, %v292_v32  ;;  %v61_v32 = vld [vmem:[#allocation3 + $0x8] sm:$0xff] }
 0x627   :  { %799 = vmatmul.msk.f32.gmra.mxu0 %vm68_vm0, %v61_v32 }
 0x628   :  { %v313_v35 = vrot.slane %v311_v34, 4 }
 0x62a   :  { %314 = vrot.lane.b32.xlu1 %v313_v35, %s962_s2 }
 0x69c   :  { %v315_v52 = vpop.permute.xlu1 %314 }
 0x69d   :  { %v317_v53 = vadd.f32 %v315_v52, %v306_v50 }
 0x69f   :  { %v336_v55 = vmul.f32 %v335_v54, %v317_v53 }
 0x6a1   :  { %848 = vtanh.f32 %v336_v55 }
 0x6a4   :  { %v95_v35 = vpop.f32.mrf.mxu0 }
 0x6a5   :  { %v1094_v36 = vadd.f32 %v1033_v10, %v95_v35 }
 0x6a7   :  { %v849_v56 = vpop.eup %848 }
 0x6a8   :  { %339 = vrot.lane.b32.xlu2 %v849_v56, %s962_s2 }
 0x702   :  { %v340_v57 = vpop.permute.xlu2 %339 }
 0x703   :  { %803 = vmatmul.msk.f32.vlgmr.msrb.gmra.mxu1 %vm105_vm1, %v340_v57 }
 0x780   :  { %v360_v58 = vpop.f32.mrf.mxu1 }
 0x781   :  { %v364_v59 = vrot.slane %v360_v58, 2 }
 0x783   :  { %365 = vrot.lane.b32.xlu0 %v364_v59, %s960_s3 }
 0x7f5   :  { %v366_v60 = vpop.permute.xlu0 %365 }
 0x7f6   :  { %v368_v61 = vadd.f32 %v366_v60, %v1036_v12 }
 0x7f8   :  { %850 = vtanh.f32 %v368_v61  ;;  %v376_v62 = vrot.slane %v368_v61, 6 }
 0x7fa   :  { %v1080_v63 = vmax.f32 %v1066_v25, %v376_v62 }
 0x7fc   :  { %v383_v0 = vrot.slane %v1080_v63, 2  ;;  %v379_v11 = vsub.f32 %v1066_v25, %v1080_v63 }
 0x7fe   :  { %v851_v1 = vpop.eup %850  ;;  %v385_v2 = vsub.f32 %v368_v61, %v383_v0  ;;  %v380_v13 = vmul.f32 1.442695, %v379_v11 }
 0x7ff   :  { %371 = vrot.lane.b32.xlu1 %v851_v1, %s961_s23 }
 0x800   :  { %v386_v3 = vmul.f32 1.442695, %v385_v2 }
 0x802   :  { %852 = vpow2.f32 %v386_v3 }
 0x803   :  { %854 = vpow2.f32 %v380_v13 }
 0x808   :  { %v853_v4 = vpop.eup %852 }
 0x809   :  { %390 = vrot.lane.b32.xlu2 %v853_v4, %s962_s2  ;;  %v855_v14 = vpop.eup %854  ;;  %v401_v15 = vrot.slane %v853_v4, 6 }
 0x80a   :  { %v400_v16 = vmul.f32 %v855_v14, %v321_v41  ;;  %v388_v24 = vmul.f32 %v855_v14, %v317_v53 }
 0x80c   :  { %v403_v17 = vadd.f32 %v401_v15, %v400_v16 }
 0x80e   :  { %856 = vrcp.f32 %v403_v17  ;;  %v415_v22 = vand.u32 2147483648, %v403_v17  ;;  %vm409_vm15 = vweird.f32 %v403_v17  ;;  %v413_v23 = vand.u32 2147483647, %v403_v17 }
 0x810   :  { %v416_v25 = vor.u32 1.1754944e-38, %v415_v22  ;;  %vm414_vm3 = vcmp.eq.f32.partialorder %v413_v23, 8.507059e+37 }
 0x814   :  { %v857_v18 = vpop.eup %856 }
 0x815   :  { %v405_v19 = vmul.f32 %v857_v18, %v403_v17  ;;  %vm410_vm14 = vweird.f32 %v857_v18 }
 0x816   :  { %vm411_vm2 = vmor %vm409_vm15, %vm410_vm14 }
 0x817   :  { %v406_v20 = vsub.f32 1.0, %v405_v19 }
 0x819   :  { %v407_v21 = vmul.f32 %v857_v18, %v406_v20 }
 0x863   :  { %v391_v7 = vpop.permute.xlu2 %390 }
 0x871   :  { %v372_v5 = vpop.permute.xlu1 %371 }
 0x872   :  { %v374_v6 = vmul.f32 %v372_v5, %v1036_v12  ;;  %v408_v12 = vadd.f32 %v857_v18, %v407_v21 }
 0x874   :  { %v393_v8 = vmul.f32 %v391_v7, %v374_v6  ;;  %v412_v26 = vsel %vm411_vm2, %v857_v18, %v408_v12 }
 0x875   :  { %v417_v29 = vsel %vm414_vm3, %v416_v25, %v412_v26 }
 0x876   :  { %v395_v9 = vrot.slane %v393_v8, 6 }
 0x878   :  { %396 = vrot.lane.b32.xlu0 %v395_v9, %s962_s2 }
 0x8ea   :  { %v397_v27 = vpop.permute.xlu0 %396 }
 0x8eb   :  { %v399_v28 = vadd.f32 %v397_v27, %v388_v24 }
 0x8ed   :  { %v418_v30 = vmul.f32 %v417_v29, %v399_v28 }
 0x8ef   :  { %858 = vtanh.f32 %v418_v30 }
 0x8f5   :  { %v859_v31 = vpop.eup %858 }
 0x8f6   :  { %421 = vrot.lane.b32.xlu1 %v859_v31, %s962_s2 }
 0x968   :  { %v422_v33 = vpop.permute.xlu1 %421 }
 0x969   :  { %804 = vmatmul.msk.f32.vlgmr.msrb.gmra.mxu2 %vm105_vm1, %v422_v33 }
 0x9ec   :  { %v442_v34 = vpop.f32.mrf.mxu2 }
 0x9ed   :  { %446 = vrot.lane.b32.xlu2 %v442_v34, %s960_s3 }
 0xa47   :  { %v447_v37 = vpop.permute.xlu2 %446 }
 0xa48   :  { %v449_v38 = vadd.f32 %v447_v37, %v1094_v36 }
 0xa4a   :  { %860 = vtanh.f32 %v449_v38  ;;  %v1098_v39 = vmax.f32 %v1080_v63, %v449_v38 }
 0xa4c   :  { %v460_v40 = vsub.f32 %v449_v38, %v1098_v39  ;;  %v457_v47 = vsub.f32 %v1080_v63, %v1098_v39 }
 0xa4e   :  { %v461_v41 = vmul.f32 1.442695, %v460_v40  ;;  %v458_v48 = vmul.f32 1.442695, %v457_v47 }
 0xa50   :  { %v861_v42 = vpop.eup %860  ;;  %862 = vpow2.f32 %v461_v41 }
 0xa51   :  { %452 = vrot.lane.b32.xlu0 %v861_v42, %s961_s23  ;;  %864 = vpow2.f32 %v458_v48 }
 0xa56   :  { %v863_v43 = vpop.eup %862 }
 0xa57   :  { %465 = vrot.lane.b32.xlu1 %v863_v43, %s962_s2  ;;  %v865_v50 = vpop.eup %864 }
 0xa58   :  { %v474_v51 = vmul.f32 %v865_v50, %v403_v17  ;;  %v463_v59 = vmul.f32 %v865_v50, %v399_v28 }
 0xa5a   :  { %v475_v49 = vadd.f32 %v863_v43, %v474_v51 }
 0xa5c   :  { %866 = vrcp.f32 %v475_v49  ;;  %v487_v57 = vand.u32 2147483648, %v475_v49  ;;  %vm481_vm4 = vweird.f32 %v475_v49  ;;  %v485_v58 = vand.u32 2147483647, %v475_v49 }
 0xa5e   :  { %v488_v61 = vor.u32 1.1754944e-38, %v487_v57  ;;  %vm486_vm6 = vcmp.eq.f32.partialorder %v485_v58, 8.507059e+37 }
 0xa62   :  { %v867_v52 = vpop.eup %866 }
 0xa63   :  { %v477_v53 = vmul.f32 %v867_v52, %v475_v49  ;;  %vm482_vm0 = vweird.f32 %v867_v52 }
 0xa64   :  { %vm483_vm5 = vmor %vm481_vm4, %vm482_vm0 }
 0xa65   :  { %v478_v54 = vsub.f32 1.0, %v477_v53 }
 0xa67   :  { %v479_v55 = vmul.f32 %v867_v52, %v478_v54 }
 0xa69   :  { %v480_v56 = vadd.f32 %v867_v52, %v479_v55 }
 0xa6b   :  { %v484_v60 = vsel %vm483_vm5, %v867_v52, %v480_v56 }
 0xa6c   :  { %v489_v0 = vsel %vm486_vm6, %v488_v61, %v484_v60 }
 0xac3   :  { %v453_v44 = vpop.permute.xlu0 %452 }
 0xac4   :  { %v455_v10 = vmul.f32 %v453_v44, %v1094_v36 }
 0xac9   :  { %v466_v45 = vpop.permute.xlu1 %465 }
 0xaca   :  { %v468_v46 = vmul.f32 %v466_v45, %v455_v10 }
 0xacc   :  { %470 = vrot.lane.b32.xlu2 %v468_v46, %s962_s2 }
 0xb26   :  { %v471_v62 = vpop.permute.xlu2 %470 }
 0xb27   :  { %v473_v63 = vadd.f32 %v471_v62, %v463_v59 }
 0xb29   :  { %v490_v1 = vmul.f32 %v489_v0, %v473_v63 }
 0xb2b   :  { %868 = vtanh.f32 %v490_v1 }
 0xb31   :  { %v869_v2 = vpop.eup %868 }
 0xb32   :  { %493 = vrot.lane.b32.xlu0 %v869_v2, %s962_s2 }
 0xba4   :  { %v494_v3 = vpop.permute.xlu0 %493 }
 0xba5   :  { %805 = vmatmul.msk.f32.vlgmr.msrb.gmra.mxu3 %vm105_vm1, %v494_v3 }
 0xc28   :  { %v514_v4 = vpop.f32.mrf.mxu3 }
 0xc29   :  { %v518_v5 = vrot.slane %v514_v4, 6 }
 0xc2b   :  { %519 = vrot.lane.b32.xlu1 %v518_v5, %s960_s3 }
 0xc9d   :  { %v520_v6 = vpop.permute.xlu1 %519 }
 0xc9e   :  { %v522_v7 = vadd.f32 %v520_v6, %v1094_v36 }
 0xca0   :  { %870 = vtanh.f32 %v522_v7  ;;  %v530_v8 = vrot.slane %v522_v7, 2 }
 0xca2   :  { %v1112_v9 = vmax.f32 %v1098_v39, %v530_v8 }
 0xca4   :  { %v537_v11 = vrot.slane %v1112_v9, 6  ;;  %v533_v12 = vsub.f32 %v1098_v39, %v1112_v9 }
 0xca6   :  { %v871_v13 = vpop.eup %870  ;;  %v539_v14 = vsub.f32 %v522_v7, %v537_v11  ;;  %v534_v22 = vmul.f32 1.442695, %v533_v12 }
 0xca7   :  { %525 = vrot.lane.b32.xlu2 %v871_v13, %s961_s23 }
 0xca8   :  { %v540_v15 = vmul.f32 1.442695, %v539_v14 }
 0xcaa   :  { %872 = vpow2.f32 %v540_v15 }
 0xcab   :  { %874 = vpow2.f32 %v534_v22 }
 0xcb0   :  { %v873_v16 = vpop.eup %872 }
 0xcb1   :  { %544 = vrot.lane.b32.xlu0 %v873_v16, %s962_s2  ;;  %v875_v23 = vpop.eup %874  ;;  %v555_v24 = vrot.slane %v873_v16, 2 }
 0xcb2   :  { %v554_v26 = vmul.f32 %v875_v23, %v475_v49  ;;  %v542_v34 = vmul.f32 %v875_v23, %v473_v63 }
 0xcb4   :  { %v557_v25 = vadd.f32 %v555_v24, %v554_v26 }
 0xcb6   :  { %876 = vrcp.f32 %v557_v25  ;;  %v569_v32 = vand.u32 2147483648, %v557_v25  ;;  %vm563_vm8 = vweird.f32 %v557_v25  ;;  %v567_v33 = vand.u32 2147483647, %v557_v25 }
 0xcb8   :  { %v570_v37 = vor.u32 1.1754944e-38, %v569_v32  ;;  %vm568_vm10 = vcmp.eq.f32.partialorder %v567_v33, 8.507059e+37 }
 0xcbc   :  { %v877_v27 = vpop.eup %876 }
 0xcbd   :  { %v559_v28 = vmul.f32 %v877_v27, %v557_v25  ;;  %vm564_vm7 = vweird.f32 %v877_v27 }
 0xcbe   :  { %vm565_vm9 = vmor %vm563_vm8, %vm564_vm7 }
 0xcbf   :  { %v560_v29 = vsub.f32 1.0, %v559_v28 }
 0xcc1   :  { %v561_v30 = vmul.f32 %v877_v27, %v560_v29 }
 0xcc3   :  { %v562_v31 = vadd.f32 %v877_v27, %v561_v30 }
 0xcc5   :  { %v566_v35 = vsel %vm565_vm9, %v877_v27, %v562_v31 }
 0xcc6   :  { %v571_v40 = vsel %vm568_vm10, %v570_v37, %v566_v35 }
 0xd01   :  { %v526_v17 = vpop.permute.xlu2 %525 }
 0xd02   :  { %v528_v18 = vmul.f32 %v526_v17, %v1094_v36 }
 0xd23   :  { %v545_v19 = vpop.permute.xlu0 %544 }
 0xd24   :  { %v547_v20 = vmul.f32 %v545_v19, %v528_v18 }
 0xd26   :  { %v549_v21 = vrot.slane %v547_v20, 2 }
 0xd28   :  { %550 = vrot.lane.b32.xlu1 %v549_v21, %s962_s2 }
 0xd9a   :  { %v551_v38 = vpop.permute.xlu1 %550 }
 0xd9b   :  { %v553_v39 = vadd.f32 %v551_v38, %v542_v34 }
 0xd9d   :  { %v572_v41 = vmul.f32 %v571_v40, %v553_v39 }
 0xd9f   :  { %878 = vtanh.f32 %v572_v41 }
 0xda5   :  { %v879_v42 = vpop.eup %878 }
 0xda6   :  { %575 = vrot.lane.b32.xlu2 %v879_v42, %s962_s2  ;;  %v741_v42 = vld [vmem:[%s1161_s5 + $0x18] sm:$0xff] }
 0xda7   :  { %763 = vmatpush.msra.mxu2 %v741_v42 }
 0xe00   :  { %v576_v43 = vpop.permute.xlu2 %575 }
 0xe01   :  { %806 = vmatmul.msk.f32.vlgmr.msrb.gmra.mxu0 %vm105_vm1, %v576_v43  ;;  %v740_v43 = vld [vmem:[%s1161_s5 + $0x10] sm:$0xff] }
 0xe02   :  { %764 = vmatpush.msra.mxu2 %v740_v43 }
 0xe7e   :  { %v596_v44 = vpop.f32.mrf.mxu0 }
 0xe7f   :  { %v600_v10 = vrot.slane %v596_v44, 4 }
 0xe81   :  { %601 = vrot.lane.b32.xlu0 %v600_v10, %s960_s3  ;;  %v738_v10 = vld [vmem:[%s1161_s5] sm:$0xff] }
 0xef3   :  { %v602_v45 = vpop.permute.xlu0 %601 }
 0xef4   :  { %v604_v46 = vadd.f32 %v602_v45, %v1094_v36 }
 0xef6   :  { %880 = vtanh.f32 %v604_v46  ;;  %v612_v47 = vrot.slane %v604_v46, 4 }
 0xef8   :  { %v614_v48 = vmax.f32 %v1112_v9, %v612_v47 }
 0xefa   :  { %v619_v50 = vrot.slane %v614_v48, 4  ;;  %v615_v59 = vsub.f32 %v1112_v9, %v614_v48 }
 0xefc   :  { %v881_v51 = vpop.eup %880  ;;  %v621_v49 = vsub.f32 %v604_v46, %v619_v50  ;;  %v616_v60 = vmul.f32 1.442695, %v615_v59  ;;  %v819_v59 = vld [vmem:[#allocation2] ss:$0 sm:$0xff] }
 0xefd   :  { %607 = vrot.lane.b32.xlu1 %v881_v51, %s961_s23 }
 0xefe   :  { %v622_v52 = vmul.f32 1.442695, %v621_v49 }
 0xf00   :  { %882 = vpow2.f32 %v622_v52 }
 0xf01   :  { %884 = vpow2.f32 %v616_v60 }
 0xf06   :  { %v883_v53 = vpop.eup %882 }
 0xf07   :  { %626 = vrot.lane.b32.xlu2 %v883_v53, %s962_s2  ;;  %v885_v61 = vpop.eup %884  ;;  %v637_v62 = vrot.slane %v883_v53, 4 }
 0xf08   :  { %v636_v63 = vmul.f32 %v885_v61, %v557_v25  ;;  %v624_v8 = vmul.f32 %v885_v61, %v553_v39 }
 0xf0a   :  { %v639_v0 = vadd.f32 %v637_v62, %v636_v63 }
 0xf0c   :  { %886 = vrcp.f32 %v639_v0  ;;  %v651_v6 = vand.u32 2147483648, %v639_v0  ;;  %vm645_vm12 = vweird.f32 %v639_v0  ;;  %v649_v7 = vand.u32 2147483647, %v639_v0 }
 0xf0e   :  { %v652_v9 = vor.u32 1.1754944e-38, %v651_v6  ;;  %vm650_vm14 = vcmp.eq.f32.partialorder %v649_v7, 8.507059e+37 }
 0xf12   :  { %v887_v1 = vpop.eup %886 }
 0xf13   :  { %v641_v2 = vmul.f32 %v887_v1, %v639_v0  ;;  %vm646_vm11 = vweird.f32 %v887_v1 }
 0xf14   :  { %vm647_vm13 = vmor %vm645_vm12, %vm646_vm11 }
 0xf15   :  { %v642_v3 = vsub.f32 1.0, %v641_v2 }
 0xf17   :  { %v643_v4 = vmul.f32 %v887_v1, %v642_v3 }
 0xf19   :  { %v644_v5 = vadd.f32 %v887_v1, %v643_v4 }
 0xf1b   :  { %v648_v11 = vsel %vm647_vm13, %v887_v1, %v644_v5 }
 0xf1c   :  { %v653_v15 = vsel %vm650_vm14, %v652_v9, %v648_v11 }
 0xf61   :  { %v627_v56 = vpop.permute.xlu2 %626 }
 0xf6f   :  { %v608_v54 = vpop.permute.xlu1 %607 }
 0xf70   :  { %v610_v55 = vmul.f32 %v608_v54, %v1094_v36 }
 0xf72   :  { %v629_v57 = vmul.f32 %v627_v56, %v610_v55 }
 0xf74   :  { %v631_v58 = vrot.slane %v629_v57, 4 }
 0xf76   :  { %632 = vrot.lane.b32.xlu0 %v631_v58, %s962_s2 }
 0xfe8   :  { %v633_v13 = vpop.permute.xlu0 %632 }
 0xfe9   :  { %v635_v14 = vadd.f32 %v633_v13, %v624_v8 }
 0xfeb   :  { %v654_v16 = vmul.f32 %v653_v15, %v635_v14 }
 0xfed   :  { %888 = vtanh.f32 %v654_v16 }
 0xff3   :  { %v889_v17 = vpop.eup %888 }
 0xff4   :  { %657 = vrot.lane.b32.xlu1 %v889_v17, %s962_s2 }
0x1066   :  { %v658_v18 = vpop.permute.xlu1 %657 }
0x1067   :  { %807 = vmatmul.msk.f32.vlgmr.msra.gmra.mxu1 %vm105_vm1, %v658_v18 }
0x10e4   :  { %v678_v19 = vpop.f32.mrf.mxu1 }
0x10e5   :  { %v682_v20 = vrot.slane %v678_v19, 2 }
0x10e7   :  { %683 = vrot.lane.b32.xlu2 %v682_v20, %s960_s3 }
0x1141   :  { %v684_v21 = vpop.permute.xlu2 %683 }
0x1142   :  { %v686_v12 = vadd.f32 %v684_v21, %v1094_v36 }
0x1144   :  { %890 = vtanh.f32 %v686_v12  ;;  %v694_v22 = vrot.slane %v686_v12, 6 }
0x1146   :  { %v696_v23 = vmax.f32 %v614_v48, %v694_v22 }
0x1148   :  { %v697_v24 = vsub.f32 %v614_v48, %v696_v23  ;;  %v701_v26 = vrot.slane %v696_v23, 2 }
0x114a   :  { %v891_v25 = vpop.eup %890  ;;  %v698_v27 = vmul.f32 1.442695, %v697_v24  ;;  %v703_v28 = vsub.f32 %v686_v12, %v701_v26 }
0x114b   :  { %689 = vrot.lane.b32.xlu0 %v891_v25, %s961_s23 }
0x114c   :  { %v704_v29 = vmul.f32 1.442695, %v703_v28  ;;  %892 = vpow2.f32 %v698_v27 }
0x114e   :  { %894 = vpow2.f32 %v704_v29 }
0x1152   :  { %v893_v30 = vpop.eup %892 }
0x1153   :  { %v718_v33 = vmul.f32 %v893_v30, %v639_v0  ;;  %v706_v51 = vmul.f32 %v893_v30, %v635_v14 }
0x1154   :  { %v895_v31 = vpop.eup %894 }
0x1155   :  { %v719_v32 = vrot.slane %v895_v31, 6  ;;  %708 = vrot.lane.b32.xlu1 %v895_v31, %s962_s2 }
0x1157   :  { %v721_v34 = vadd.f32 %v719_v32, %v718_v33 }
0x1159   :  { %896 = vrcp.f32 %v721_v34  ;;  %v733_v48 = vand.u32 2147483648, %v721_v34  ;;  %vm727_vm2 = vweird.f32 %v721_v34  ;;  %v731_v50 = vand.u32 2147483647, %v721_v34 }
0x115b   :  { %v734_v52 = vor.u32 1.1754944e-38, %v733_v48  ;;  %vm732_vm0 = vcmp.eq.f32.partialorder %v731_v50, 8.507059e+37 }
0x115f   :  { %v897_v41 = vpop.eup %896 }
0x1160   :  { %v723_v44 = vmul.f32 %v897_v41, %v721_v34  ;;  %vm728_vm15 = vweird.f32 %v897_v41 }
0x1161   :  { %vm729_vm3 = vmor %vm727_vm2, %vm728_vm15 }
0x1162   :  { %v724_v45 = vsub.f32 1.0, %v723_v44 }
0x1164   :  { %v725_v46 = vmul.f32 %v897_v41, %v724_v45 }
0x1166   :  { %v726_v47 = vadd.f32 %v897_v41, %v725_v46 }
0x1168   :  { %v730_v49 = vsel %vm729_vm3, %v897_v41, %v726_v47 }
0x1169   :  { %v735_v55 = vsel %vm732_vm0, %v734_v52, %v730_v49 }
0x11bd   :  { %v690_v35 = vpop.permute.xlu0 %689 }
0x11be   :  { %v692_v37 = vmul.f32 %v690_v35, %v1094_v36  ;;  %v739_v36 = vld [vmem:[%s1161_s5 + $0x8] sm:$0xff] }
0x11bf   :  { %765 = vmatpush.msra.mxu2 %v739_v36 }
0x11c1   :  { %766 = vmatpush.msra.mxu2 %v738_v10 }
0x11c7   :  { %v709_v38 = vpop.permute.xlu1 %708 }
0x11c8   :  { %v711_v39 = vmul.f32 %v709_v38, %v692_v37 }
0x11ca   :  { %v713_v40 = vrot.slane %v711_v39, 6 }
0x11cc   :  { %714 = vrot.lane.b32.xlu2 %v713_v40, %s962_s2 }
0x1226   :  { %v715_v53 = vpop.permute.xlu2 %714 }
0x1227   :  { %v717_v54 = vadd.f32 %v715_v53, %v706_v51 }
0x1229   :  { %v736_v56 = vmul.f32 %v735_v55, %v717_v54 }
0x122b   :  { %898 = vtanh.f32 %v736_v56 }
0x1231   :  { %v899_v57 = vpop.eup %898 }
0x1232   :  { %747 = vrot.lane.b32.xlu0 %v899_v57, %s962_s2 }
0x12a4   :  { %v748_v58 = vpop.permute.xlu0 %747 }
0x12a5   :  { %808 = vmatmul.msk.f32.vlgmr.msra.gmra.mxu2 %vm105_vm1, %v748_v58  ;;  %vm790_vm1 = vcmask 1024  }
0x1328   :  { %v768_v60 = vpop.f32.mrf.mxu2 }
0x1329   :  { %v769_v61 = vadd.f32 %v819_v59, %v768_v60 }
0x132b   :  { %v809_v62 = vmul.f32 -1.442695, %v769_v61 }
0x132d   :  { %900 = vpow2.f32 %v809_v62 }
0x1333   :  { %v901_v63 = vpop.eup %900 }
0x1334   :  { %v774_v0 = vadd.f32 1.0, %v901_v63 }
0x1336   :  { %902 = vrcp.f32 %v774_v0  ;;  %v786_v4 = vand.u32 2147483648, %v774_v0  ;;  %v784_v6 = vand.u32 2147483647, %v774_v0  ;;  %vm780_vm5 = vweird.f32 %v774_v0 }
0x1338   :  { %v787_v8 = vor.u32 1.1754944e-38, %v786_v4  ;;  %vm785_vm7 = vcmp.eq.f32.partialorder %v784_v6, 8.507059e+37 }
0x133c   :  { %v903_v1 = vpop.eup %902 }
0x133d   :  { %v776_v2 = vmul.f32 %v903_v1, %v774_v0  ;;  %vm781_vm4 = vweird.f32 %v903_v1 }
0x133e   :  { %vm782_vm6 = vmor %vm780_vm5, %vm781_vm4 }
0x133f   :  { %v777_v3 = vsub.f32 1.0, %v776_v2 }
0x1341   :  { %v778_v5 = vmul.f32 %v903_v1, %v777_v3 }
0x1343   :  { %v779_v7 = vadd.f32 %v903_v1, %v778_v5 }
0x1345   :  { %v783_v11 = vsel %vm782_vm6, %v903_v1, %v779_v7 }
0x1346   :  { %v788_v9 = vsel %vm785_vm7, %v787_v8, %v783_v11 }
0x1347   :  { %791 = vst.msk [vmem:[%s1163_s7] sm:$0x3] %vm790_vm1, %v788_v9 }
0x1348   :  { %796 = vsyncpa [#allocation4], 1 }
0x1349   :  { %797 = vsyncpa [#allocation6], 1 }

</bundles_post_ra>
